<compile_context>
chip_gen: v5e
topology: v5e:2x2
jax: 0.10.0
libtpu: 0.0.40
codegen_flags: <defaults>
</compile_context>

<pallas_src>
import functools
import math

import jax
import jax.numpy as jnp
from jax import lax
from jax.experimental import pallas as pl
from jax.experimental import pallas as pallas  # noqa: F401 (alias clarity)
from jax.experimental.pallas import tpu as pltpu  # noqa: F401 (not needed at these shapes)

# -------------------- config (small, consistent with the module) --------------------
EMBED_DIM = 32
NUM_HEADS = 4
HEAD_DIM = EMBED_DIM // NUM_HEADS          # 8
NUM_RANDOM_FEATURES = 8                    # must be <= HEAD_DIM
BATCH = 2
SEQ_LEN = 8


# -------------------- fused Pallas kernel (single invocation) --------------------
def _fast_attention_kernel(x_ref, wq_ref, wk_ref, wv_ref, wo_ref,
                           omq_ref, omk_ref, sqmask_ref, bdones_ref, o_ref,
                           *, batch, seq_len):
    """Whole problem in one shot: x (B*S, E) -> output (B*S, E), all in VMEM.

    omq/omk are block-diagonal (E, H*R); sqmask is (E, H*R) block ones (for
    broadcasting ||a_h||^2 across that head's R feature lanes); bdones is
    (H*R, E) block ones (KV cross-head mask AND denominator broadcaster).
    The 1/sqrt(head_dim) scale is already folded into wq/wk.
    """
    x = x_ref[...]                                                    # (B*S, E)

    # Lane-aligned per-head projections: three full-width matmuls, no slicing.
    q = jnp.dot(x, wq_ref[...], preferred_element_type=jnp.float32)  # (B*S, E)
    k = jnp.dot(x, wk_ref[...], preferred_element_type=jnp.float32)  # (B*S, E)
    v = jnp.dot(x, wv_ref[...], preferred_element_type=jnp.float32)  # (B*S, E)

    sqmask = sqmask_ref[...]                                          # (E, H*R)
    bd_ones = bdones_ref[...]                                         # (H*R, E)

    def positive_feature_map(a, omega_bd):
        # All heads at once: a (B*S, E), omega_bd block-diagonal (E, H*R).
        rf = jnp.dot(a, omega_bd, preferred_element_type=jnp.float32)  # (B*S, H*R)
        rf = jnp.minimum(rf, 50.0)                                      # clamp(max=50)
        # ||a_h||^2 broadcast over each head's R lanes, via MXU indicator matmul.
        sq = jnp.dot(a * a, sqmask, preferred_element_type=jnp.float32)
        # == exp(-clamp(||a||, 1e-8)^2 / 2) clamped at 1e-8 (sq >= 0).
        nt = jnp.maximum(jnp.exp(-0.5 * jnp.maximum(sq, 1e-16)), 1e-8)
        return nt * jnp.exp(rf)                                         # (B*S, H*R)

    q_phi = positive_feature_map(q, omq_ref[...])                      # (B*S, H*R)
    k_phi = positive_feature_map(k, omk_ref[...])                      # (B*S, H*R)

    attn_rows = []
    for b in range(batch):                 # tiny unrolled loop; S-contraction per batch
        lo = b * seq_len
        qp = q_phi[lo:lo + seq_len]        # (S, H*R)  sublane-aligned static slice
        kp = k_phi[lo:lo + seq_len]        # (S, H*R)
        vb = v[lo:lo + seq_len]            # (S, E)

        # All-head KV = K_phi^T @ V (contract S, no explicit transpose); the
        # cross-head blocks are spurious -> zero them with the block-diag mask.
        kv = lax.dot_general(kp, vb, (((0,), (0,)), ((), ())),
                             preferred_element_type=jnp.float32)       # (H*R, E)
        kv = kv * bd_ones                                              # keep diag head blocks

        num = jnp.dot(qp, kv, preferred_element_type=jnp.float32)      # (S, E), per-head aligned

        # Denominator: Q_phi @ (K_phi^T @ 1), broadcast over each head's D lanes.
        k_ones = jnp.sum(kp, axis=0, keepdims=True)                    # (1, H*R)
        denom = jnp.dot(qp * k_ones, bd_ones,
                        preferred_element_type=jnp.float32)            # (S, E), > 0
        attn_rows.append(num / denom)

    attn = jnp.concatenate(attn_rows, axis=0)                          # (B*S, E)
    # Output projection: one full-width matmul, one full-slab store.
    o_ref[...] = jnp.dot(attn, wo_ref[...], preferred_element_type=jnp.float32)

    # TODO(synk): masked=True branch (sequence mask on V + hard-coded
    # (seq_len, 64) causal mask on K_phi) is not implemented; only the default
    # forward path (masked=None) is reproduced here.


def fast_attention_forward(kernel_params, x, omega_q, omega_k):
    """Fused FastAttention forward. omega_{q,k} are fresh per call (as in the
    PyTorch reference, which redraws + QR's Gaussian features every forward)."""
    B, S, E = x.shape
    H = NUM_HEADS

    # Block-diagonal feature matrices (depend on the per-call omegas; tiny).
    eye_h = jnp.eye(H, dtype=jnp.float32)
    omq_bd = jnp.kron(eye_h, omega_q.astype(jnp.float32))   # (E, H*R)
    omk_bd = jnp.kron(eye_h, omega_k.astype(jnp.float32))   # (E, H*R)

    kernel = functools.partial(_fast_attention_kernel, batch=B, seq_len=S)
    out = pl.pallas_call(
        kernel,
        out_shape=jax.ShapeDtypeStruct((B * S, E), jnp.float32),
        # No grid / BlockSpecs: single invocation, every operand whole in VMEM.
        # (If S or E are scaled to production sizes, reintroduce a sequence
        #  grid axis and size tiles against v7x's 64 MiB VMEM.)
    )(x.reshape(B * S, E).astype(jnp.float32),
      kernel_params["Wq_s"], kernel_params["Wk_s"],
      kernel_params["Wv"], kernel_params["Wo"],
      omq_bd, omk_bd,
      kernel_params["sqmask"], kernel_params["bd_ones"])
    return out.reshape(B, S, E)


# -------------------- host-side helpers --------------------
def init_params(key):
    """nn.Linear(bias=False) default init: U(-1/sqrt(fan_in), 1/sqrt(fan_in)),
    stored (in_features, out_features)."""
    E = EMBED_DIM
    s = 1.0 / math.sqrt(E)
    kq, kk, kv, ko = jax.random.split(key, 4)
    return {
        "Wq": jax.random.uniform(kq, (E, E), jnp.float32, -s, s),
        "Wk": jax.random.uniform(kk, (E, E), jnp.float32, -s, s),
        "Wv": jax.random.uniform(kv, (E, E), jnp.float32, -s, s),
        "Wo": jax.random.uniform(ko, (E, E), jnp.float32, -s, s),
    }


def prepare_kernel_params(params):
    """One-time param transform: fold 1/sqrt(head_dim) into the Q/K projection
    weights and build the static block-diagonal indicator matrices."""
    H, D, R = NUM_HEADS, HEAD_DIM, NUM_RANDOM_FEATURES
    scale = jnp.float32(1.0 / math.sqrt(D))
    eye_h = jnp.eye(H, dtype=jnp.float32)
    return {
        "Wq_s": params["Wq"] * scale,
        "Wk_s": params["Wk"] * scale,
        "Wv": params["Wv"],
        "Wo": params["Wo"],
        "sqmask": jnp.kron(eye_h, jnp.ones((D, R), jnp.float32)),   # (E, H*R)
        "bd_ones": jnp.kron(eye_h, jnp.ones((R, D), jnp.float32)),  # (H*R, E)
    }


def draw_feature_maps(key):
    """Fresh Gaussian features + QR (reduced), as in positive_random_feature_map.
    QR has no Pallas equivalent; done host-side on the tiny (D, R) matrix."""
    D, R = HEAD_DIM, NUM_RANDOM_FEATURES

    def one(k):
        om = jax.random.normal(k, (D, R), jnp.float32) / math.sqrt(D)
        qm, _ = jnp.linalg.qr(om)          # reduced
        return qm

    kq, kk = jax.random.split(key)
    return one(kq), one(kk)


def fast_attention_ref(params, x, omega_q, omega_k):
    """Pure-JAX mirror of the PyTorch forward (masked=None) for validation."""
    B, S, E = x.shape
    H, D = NUM_HEADS, HEAD_DIM

    def proj(w):
        return (x.reshape(B * S, E) @ w).reshape(B, S, H, D).transpose(0, 2, 1, 3)

    Q = proj(params["Wq"]) / math.sqrt(D)
    K = proj(params["Wk"]) / math.sqrt(D)
    V = proj(params["Wv"])

    def prf(A, omega):
        rf = jnp.minimum(A @ omega, 50.0)
        l2 = jnp.maximum(jnp.linalg.norm(A, axis=-1, keepdims=True), 1e-8)
        nt = jnp.maximum(jnp.exp(-(l2 ** 2) / 2.0), 1e-8)
        return nt * jnp.exp(rf)

    Qp, Kp = prf(Q, omega_q), prf(K, omega_k)
    KV = jnp.einsum("bhsr,bhsd->bhrd", Kp, V)
    QKV = jnp.einsum("bhsr,bhrd->bhsd", Qp, KV)
    K_ones = Kp.sum(axis=2)                                  # (B,H,R)
    QK_ones = jnp.einsum("bhsr,bhr->bhs", Qp, K_ones)        # (B,H,S)
    attn = QKV / QK_ones[..., None]
    attn = attn.transpose(0, 2, 1, 3).reshape(B, S, E)
    return (attn.reshape(B * S, E) @ params["Wo"]).reshape(B, S, E)


if __name__ == "__main__":
    key = jax.random.PRNGKey(0)
    k_param, k_x, k_feat = jax.random.split(key, 3)
    params = init_params(k_param)
    kernel_params = prepare_kernel_params(params)   # one-time (outside jit)
    x = jax.random.normal(k_x, (BATCH, SEQ_LEN, EMBED_DIM), jnp.float32)
    omega_q, omega_k = draw_feature_maps(k_feat)

    fwd = jax.jit(fast_attention_forward)
    out = jax.block_until_ready(fwd(kernel_params, x, omega_q, omega_k))

    assert out.shape == (BATCH, SEQ_LEN, EMBED_DIM)
    assert bool(jnp.all(jnp.isfinite(out)))
    ref = fast_attention_ref(params, x, omega_q, omega_k)
    assert jnp.allclose(out, ref, rtol=5e-2, atol=5e-2), \
        float(jnp.max(jnp.abs(out - ref)))
    print("KERNEL_OK")
</pallas_src>

<mosaic_0001>
module attributes {stable_mosaic.version = 11 : i64} {
  func.func @_fast_attention_kernel(%arg0: memref<16x32xf32, #tpu.memory_space<vmem>>, %arg1: memref<32x32xf32, #tpu.memory_space<vmem>>, %arg2: memref<32x32xf32, #tpu.memory_space<vmem>>, %arg3: memref<32x32xf32, #tpu.memory_space<vmem>>, %arg4: memref<32x32xf32, #tpu.memory_space<vmem>>, %arg5: memref<32x32xf32, #tpu.memory_space<vmem>>, %arg6: memref<32x32xf32, #tpu.memory_space<vmem>>, %arg7: memref<32x32xf32, #tpu.memory_space<vmem>>, %arg8: memref<32x32xf32, #tpu.memory_space<vmem>>, %arg9: memref<16x32xf32, #tpu.memory_space<vmem>>) attributes {dimension_semantics = [], scalar_prefetch = 0 : i64, scratch_operands = 0 : i64, tpu.core_type = #tpu.core_type<tc>} {
    %c0 = arith.constant 0 : index
    %c0_0 = arith.constant 0 : index
    %0 = vector.load %arg0[%c0, %c0_0] : memref<16x32xf32, #tpu.memory_space<vmem>>, vector<16x32xf32>
    %c0_1 = arith.constant 0 : index
    %c0_2 = arith.constant 0 : index
    %1 = vector.load %arg1[%c0_1, %c0_2] : memref<32x32xf32, #tpu.memory_space<vmem>>, vector<32x32xf32>
    %cst = arith.constant dense<0.000000e+00> : vector<16x32xf32>
    %2 = tpu.matmul %0, %1, %cst {dimension_numbers = #tpu.dot_dimension_numbers<[1], [0], [0], [1], [0, 0, 1, 1], [], []>} : vector<16x32xf32>, vector<32x32xf32>, vector<16x32xf32> -> vector<16x32xf32>
    %c0_3 = arith.constant 0 : index
    %c0_4 = arith.constant 0 : index
    %3 = vector.load %arg2[%c0_3, %c0_4] : memref<32x32xf32, #tpu.memory_space<vmem>>, vector<32x32xf32>
    %cst_5 = arith.constant dense<0.000000e+00> : vector<16x32xf32>
    %4 = tpu.matmul %0, %3, %cst_5 {dimension_numbers = #tpu.dot_dimension_numbers<[1], [0], [0], [1], [0, 0, 1, 1], [], []>} : vector<16x32xf32>, vector<32x32xf32>, vector<16x32xf32> -> vector<16x32xf32>
    %c0_6 = arith.constant 0 : index
    %c0_7 = arith.constant 0 : index
    %5 = vector.load %arg3[%c0_6, %c0_7] : memref<32x32xf32, #tpu.memory_space<vmem>>, vector<32x32xf32>
    %cst_8 = arith.constant dense<0.000000e+00> : vector<16x32xf32>
    %6 = tpu.matmul %0, %5, %cst_8 {dimension_numbers = #tpu.dot_dimension_numbers<[1], [0], [0], [1], [0, 0, 1, 1], [], []>} : vector<16x32xf32>, vector<32x32xf32>, vector<16x32xf32> -> vector<16x32xf32>
    %c0_9 = arith.constant 0 : index
    %c0_10 = arith.constant 0 : index
    %7 = vector.load %arg7[%c0_9, %c0_10] : memref<32x32xf32, #tpu.memory_space<vmem>>, vector<32x32xf32>
    %c0_11 = arith.constant 0 : index
    %c0_12 = arith.constant 0 : index
    %8 = vector.load %arg8[%c0_11, %c0_12] : memref<32x32xf32, #tpu.memory_space<vmem>>, vector<32x32xf32>
    %c0_13 = arith.constant 0 : index
    %c0_14 = arith.constant 0 : index
    %9 = vector.load %arg5[%c0_13, %c0_14] : memref<32x32xf32, #tpu.memory_space<vmem>>, vector<32x32xf32>
    %cst_15 = arith.constant dense<0.000000e+00> : vector<16x32xf32>
    %10 = tpu.matmul %2, %9, %cst_15 {dimension_numbers = #tpu.dot_dimension_numbers<[1], [0], [0], [1], [0, 0, 1, 1], [], []>} : vector<16x32xf32>, vector<32x32xf32>, vector<16x32xf32> -> vector<16x32xf32>
    %cst_16 = arith.constant 5.000000e+01 : f32
    %11 = vector.broadcast %cst_16 : f32 to vector<16x32xf32>
    %12 = arith.minimumf %10, %11 : vector<16x32xf32>
    %13 = arith.mulf %2, %2 : vector<16x32xf32>
    %cst_17 = arith.constant dense<0.000000e+00> : vector<16x32xf32>
    %14 = tpu.matmul %13, %7, %cst_17 {dimension_numbers = #tpu.dot_dimension_numbers<[1], [0], [0], [1], [0, 0, 1, 1], [], []>} : vector<16x32xf32>, vector<32x32xf32>, vector<16x32xf32> -> vector<16x32xf32>
    %cst_18 = arith.constant 1.000000e-16 : f32
    %15 = vector.broadcast %cst_18 : f32 to vector<16x32xf32>
    %16 = arith.maximumf %14, %15 : vector<16x32xf32>
    %cst_19 = arith.constant -5.000000e-01 : f32
    %17 = vector.broadcast %cst_19 : f32 to vector<16x32xf32>
    %18 = arith.mulf %17, %16 : vector<16x32xf32>
    %19 = math.exp %18 : vector<16x32xf32>
    %cst_20 = arith.constant 9.99999993E-9 : f32
    %20 = vector.broadcast %cst_20 : f32 to vector<16x32xf32>
    %21 = arith.maximumf %19, %20 : vector<16x32xf32>
    %22 = math.exp %12 : vector<16x32xf32>
    %23 = arith.mulf %21, %22 : vector<16x32xf32>
    %c0_21 = arith.constant 0 : index
    %c0_22 = arith.constant 0 : index
    %24 = vector.load %arg6[%c0_21, %c0_22] : memref<32x32xf32, #tpu.memory_space<vmem>>, vector<32x32xf32>
    %cst_23 = arith.constant dense<0.000000e+00> : vector<16x32xf32>
    %25 = tpu.matmul %4, %24, %cst_23 {dimension_numbers = #tpu.dot_dimension_numbers<[1], [0], [0], [1], [0, 0, 1, 1], [], []>} : vector<16x32xf32>, vector<32x32xf32>, vector<16x32xf32> -> vector<16x32xf32>
    %cst_24 = arith.constant 5.000000e+01 : f32
    %26 = vector.broadcast %cst_24 : f32 to vector<16x32xf32>
    %27 = arith.minimumf %25, %26 : vector<16x32xf32>
    %28 = arith.mulf %4, %4 : vector<16x32xf32>
    %cst_25 = arith.constant dense<0.000000e+00> : vector<16x32xf32>
    %29 = tpu.matmul %28, %7, %cst_25 {dimension_numbers = #tpu.dot_dimension_numbers<[1], [0], [0], [1], [0, 0, 1, 1], [], []>} : vector<16x32xf32>, vector<32x32xf32>, vector<16x32xf32> -> vector<16x32xf32>
    %cst_26 = arith.constant 1.000000e-16 : f32
    %30 = vector.broadcast %cst_26 : f32 to vector<16x32xf32>
    %31 = arith.maximumf %29, %30 : vector<16x32xf32>
    %cst_27 = arith.constant -5.000000e-01 : f32
    %32 = vector.broadcast %cst_27 : f32 to vector<16x32xf32>
    %33 = arith.mulf %32, %31 : vector<16x32xf32>
    %34 = math.exp %33 : vector<16x32xf32>
    %cst_28 = arith.constant 9.99999993E-9 : f32
    %35 = vector.broadcast %cst_28 : f32 to vector<16x32xf32>
    %36 = arith.maximumf %34, %35 : vector<16x32xf32>
    %37 = math.exp %27 : vector<16x32xf32>
    %38 = arith.mulf %36, %37 : vector<16x32xf32>
    %39 = vector.extract_strided_slice %23 {offsets = [0, 0], sizes = [8, 32], strides = [1, 1]} : vector<16x32xf32> to vector<8x32xf32>
    %40 = vector.extract_strided_slice %38 {offsets = [0, 0], sizes = [8, 32], strides = [1, 1]} : vector<16x32xf32> to vector<8x32xf32>
    %41 = vector.extract_strided_slice %6 {offsets = [0, 0], sizes = [8, 32], strides = [1, 1]} : vector<16x32xf32> to vector<8x32xf32>
    %cst_29 = arith.constant dense<0.000000e+00> : vector<32x32xf32>
    %42 = tpu.matmul %40, %41, %cst_29 {dimension_numbers = #tpu.dot_dimension_numbers<[0], [0], [1], [1], [0, 1, 1, 1], [], []>} : vector<8x32xf32>, vector<8x32xf32>, vector<32x32xf32> -> vector<32x32xf32>
    %43 = arith.mulf %42, %8 : vector<32x32xf32>
    %cst_30 = arith.constant dense<0.000000e+00> : vector<8x32xf32>
    %44 = tpu.matmul %39, %43, %cst_30 {dimension_numbers = #tpu.dot_dimension_numbers<[1], [0], [0], [1], [0, 0, 1, 1], [], []>} : vector<8x32xf32>, vector<32x32xf32>, vector<8x32xf32> -> vector<8x32xf32>
    %cst_31 = arith.constant dense<0.000000e+00> : vector<32xf32>
    %45 = vector.multi_reduction <add>, %40, %cst_31 [0] : vector<8x32xf32> to vector<32xf32>
    %46 = vector.shape_cast %45 : vector<32xf32> to vector<1x32xf32>
    %47 = vector.broadcast %46 : vector<1x32xf32> to vector<8x32xf32>
    %48 = arith.mulf %39, %47 : vector<8x32xf32>
    %cst_32 = arith.constant dense<0.000000e+00> : vector<8x32xf32>
    %49 = tpu.matmul %48, %8, %cst_32 {dimension_numbers = #tpu.dot_dimension_numbers<[1], [0], [0], [1], [0, 0, 1, 1], [], []>} : vector<8x32xf32>, vector<32x32xf32>, vector<8x32xf32> -> vector<8x32xf32>
    %50 = arith.divf %44, %49 : vector<8x32xf32>
    %51 = vector.extract_strided_slice %23 {offsets = [8, 0], sizes = [8, 32], strides = [1, 1]} : vector<16x32xf32> to vector<8x32xf32>
    %52 = vector.extract_strided_slice %38 {offsets = [8, 0], sizes = [8, 32], strides = [1, 1]} : vector<16x32xf32> to vector<8x32xf32>
    %53 = vector.extract_strided_slice %6 {offsets = [8, 0], sizes = [8, 32], strides = [1, 1]} : vector<16x32xf32> to vector<8x32xf32>
    %cst_33 = arith.constant dense<0.000000e+00> : vector<32x32xf32>
    %54 = tpu.matmul %52, %53, %cst_33 {dimension_numbers = #tpu.dot_dimension_numbers<[0], [0], [1], [1], [0, 1, 1, 1], [], []>} : vector<8x32xf32>, vector<8x32xf32>, vector<32x32xf32> -> vector<32x32xf32>
    %55 = arith.mulf %54, %8 : vector<32x32xf32>
    %cst_34 = arith.constant dense<0.000000e+00> : vector<8x32xf32>
    %56 = tpu.matmul %51, %55, %cst_34 {dimension_numbers = #tpu.dot_dimension_numbers<[1], [0], [0], [1], [0, 0, 1, 1], [], []>} : vector<8x32xf32>, vector<32x32xf32>, vector<8x32xf32> -> vector<8x32xf32>
    %cst_35 = arith.constant dense<0.000000e+00> : vector<32xf32>
    %57 = vector.multi_reduction <add>, %52, %cst_35 [0] : vector<8x32xf32> to vector<32xf32>
    %58 = vector.shape_cast %57 : vector<32xf32> to vector<1x32xf32>
    %59 = vector.broadcast %58 : vector<1x32xf32> to vector<8x32xf32>
    %60 = arith.mulf %51, %59 : vector<8x32xf32>
    %cst_36 = arith.constant dense<0.000000e+00> : vector<8x32xf32>
    %61 = tpu.matmul %60, %8, %cst_36 {dimension_numbers = #tpu.dot_dimension_numbers<[1], [0], [0], [1], [0, 0, 1, 1], [], []>} : vector<8x32xf32>, vector<32x32xf32>, vector<8x32xf32> -> vector<8x32xf32>
    %62 = arith.divf %56, %61 : vector<8x32xf32>
    %63 = tpu.concatenate %50, %62 in 0 : vector<8x32xf32>, vector<8x32xf32> -> vector<16x32xf32>
    %c0_37 = arith.constant 0 : index
    %c0_38 = arith.constant 0 : index
    %64 = vector.load %arg4[%c0_37, %c0_38] : memref<32x32xf32, #tpu.memory_space<vmem>>, vector<32x32xf32>
    %cst_39 = arith.constant dense<0.000000e+00> : vector<16x32xf32>
    %65 = tpu.matmul %63, %64, %cst_39 {dimension_numbers = #tpu.dot_dimension_numbers<[1], [0], [0], [1], [0, 0, 1, 1], [], []>} : vector<16x32xf32>, vector<32x32xf32>, vector<16x32xf32> -> vector<16x32xf32>
    %c0_40 = arith.constant 0 : index
    %c0_41 = arith.constant 0 : index
    %66 = vector.load %arg9[%c0_40, %c0_41] : memref<16x32xf32, #tpu.memory_space<vmem>>, vector<16x32xf32>
    tpu.vector_store %arg9[%c0_40, %c0_41], %65 {strides = array<i32>} : memref<16x32xf32, #tpu.memory_space<vmem>>, vector<16x32xf32>,
    return
  }
}

</mosaic_0001>

<bundles_post_ra>
// kernel: fast_attention_forward.1
= control target key start
LH: loop header
LB: loop body
LE: loop exit
PB: predicated region body
PF: predicated region fallthrough
CT: control target
= control target key end

     0   :  { %vm39_vm0 = vcmask 261120   ;;  %s941_s0 = inlined_call_operand.vmem [shape: f32[16,32], index: 0, kind: input, shape index: {}]   ;;  %s942_s1 = inlined_call_operand.vmem [shape: f32[32,32], index: 1, kind: input, shape index: {}]   ;;  %s943_s2 = inlined_call_operand.vmem [shape: f32[32,32], index: 2, kind: input, shape index: {}]   ;;  %s944_s3 = inlined_call_operand.vmem [shape: f32[32,32], index: 3, kind: input, shape index: {}]   ;;  %s945_s4 = inlined_call_operand.vmem [shape: f32[32,32], index: 4, kind: input, shape index: {}]   ;;  %s946_s5 = inlined_call_operand.vmem [shape: f32[32,32], index: 5, kind: input, shape index: {}]   ;;  %s947_s6 = inlined_call_operand.vmem [shape: f32[32,32], index: 6, kind: input, shape index: {}]   ;;  %s948_s7 = inlined_call_operand.vmem [shape: f32[32,32], index: 7, kind: input, shape index: {}]   ;;  %s949_s8 = inlined_call_operand.vmem [shape: f32[32,32], index: 8, kind: input, shape index: {}]   ;;  %s950_s9 = inlined_call_operand.hbm [shape: f32[16,32], index: 9, kind: output, shape index: {}]  }
   0x1   :  { %v38_v0 = vld [vmem:[%s942_s1 + $0x18] sm:$0xff]  ;;  %v37_v1 = vld [vmem:[%s942_s1 + $0x10] sm:$0xff]  ;;  %v36_v2 = vld [vmem:[%s942_s1 + $0x8] sm:$0xff] }
   0x2   :  { %58 = vmatpush.msra.mxu0 %v38_v0  ;;  %669 = vmatpush.msra.mxu1 %v38_v0  ;;  %v99_v3 = vld [vmem:[%s944_s3 + $0x18] sm:$0xff]  ;;  %v98_v4 = vld [vmem:[%s944_s3 + $0x10] sm:$0xff]  ;;  %v35_v5 = vld [vmem:[%s942_s1] sm:$0xff] }
   0x3   :  { %673 = vmatpush.msra.mxu3 %v99_v3  ;;  %112 = vmatpush.msra.mxu2 %v99_v3  ;;  %v33_v6 = vld [vmem:[%s941_s0] sm:$0xff]  ;;  %v34_v7 = vld [vmem:[%s941_s0 + $0x8] sm:$0xff]  ;;  %v72_v8 = vld [vmem:[%s943_s2 + $0x18] sm:$0xff] }
   0x4   :  { %59 = vmatpush.msra.mxu0 %v37_v1  ;;  %670 = vmatpush.msra.mxu1 %v37_v1  ;;  %v97_v9 = vld [vmem:[%s944_s3 + $0x8] sm:$0xff] }
   0x5   :  { %674 = vmatpush.msra.mxu3 %v98_v4  ;;  %113 = vmatpush.msra.mxu2 %v98_v4 }
   0x6   :  { %60 = vmatpush.msra.mxu0 %v36_v2  ;;  %671 = vmatpush.msra.mxu1 %v36_v2 }
   0x7   :  { %14 = vsyncpa [#allocation3], 0  ;;  %v126_v10 = vld [vmem:[%s948_s7 + $0x18] sm:$0xff]  ;;  %v71_v11 = vld [vmem:[%s943_s2 + $0x10] sm:$0xff]  ;;  %675 = vmatpush.msra.mxu3 %v97_v9  ;;  %114 = vmatpush.msra.mxu2 %v97_v9  ;;  %vm327_vm1 = vcmask 64512   ;;  %s629_s26 = sshll.u32 %s950_s9, 4  ;;  %s630_s26 = int_to_ptr.hbm [resolvable:$true] %s629_s26 }
   0x8   :  { %61 = vmatpush.msra.mxu0 %v35_v5  ;;  %672 = vmatpush.msra.mxu1 %v35_v5  ;;  %v96_v12 = vld [vmem:[%s944_s3] sm:$0xff]  ;;  %v125_v13 = vld [vmem:[%s948_s7 + $0x10] sm:$0xff]  ;;  %v70_v14 = vld [vmem:[%s943_s2 + $0x8] sm:$0xff]  ;;  %s728_s27 = smov 128   ;;  %s729_s1 = smov 8  }
   0x9   :  { %641 = vmatmul.msk.f32.vlgmr.msra.gmra.mxu0 %vm39_vm0, %v33_v6  ;;  %642 = vmatmul.msk.f32.vlgmr.msra.gmra.mxu1 %vm39_vm0, %v34_v7  ;;  %v134_v15 = vld [vmem:[%s946_s5 + $0x18] sm:$0xff]  ;;  %v69_v16 = vld [vmem:[%s943_s2] sm:$0xff]  ;;  %v133_v17 = vld [vmem:[%s946_s5 + $0x10] sm:$0xff] }
   0xa   :  { %85 = vmatpush.msrb.mxu1 %v72_v8  ;;  %186 = vmatpush.msrb.mxu0 %v126_v10  ;;  %v132_v18 = vld [vmem:[%s946_s5 + $0x8] sm:$0xff]  ;;  %v131_v19 = vld [vmem:[%s946_s5] sm:$0xff]  ;;  %v216_v22 = vld [vmem:[%s947_s6 + $0x18] sm:$0xff] }
   0xb   :  { %676 = vmatpush.msra.mxu3 %v96_v12  ;;  %115 = vmatpush.msra.mxu2 %v96_v12  ;;  %v124_v20 = vld [vmem:[%s948_s7 + $0x8] sm:$0xff]  ;;  %v123_v21 = vld [vmem:[%s948_s7] sm:$0xff]  ;;  %v215_v23 = vld [vmem:[%s947_s6 + $0x10] sm:$0xff] }
   0xc   :  { %86 = vmatpush.msrb.mxu1 %v71_v11  ;;  %646 = vmatmul.msk.f32.vlgmr.msra.gmra.mxu3 %vm39_vm0, %v34_v7  ;;  %v214_v24 = vld [vmem:[%s947_s6 + $0x8] sm:$0xff]  ;;  %v213_v25 = vld [vmem:[%s947_s6] sm:$0xff]  ;;  %v875_v36 = vld [vmem:[%s949_s8 + $0x18] sm:$0xff] }
   0xd   :  { %187 = vmatpush.msrb.mxu0 %v125_v13  ;;  %153 = vmatpush.msrb.mxu3 %v134_v15  ;;  %v881_v38 = vld [vmem:[%s949_s8 + $0x10] sm:$0xff]  ;;  %v887_v39 = vld [vmem:[%s949_s8 + $0x8] sm:$0xff]  ;;  %v893_v41 = vld [vmem:[%s949_s8] sm:$0xff] }
   0xe   :  { %87 = vmatpush.msrb.mxu1 %v70_v14  ;;  %645 = vmatmul.msk.f32.vlgmr.msra.gmra.mxu2 %vm39_vm0, %v33_v6 }
   0xf   :  { %154 = vmatpush.msrb.mxu3 %v133_v17  ;;  %268 = vmatpush.msrb.mxu2 %v126_v10 }
  0x10   :  { %88 = vmatpush.msrb.mxu1 %v69_v16  ;;  %188 = vmatpush.msrb.mxu0 %v124_v20 }
  0x11   :  { %643 = vmatmul.msk.f32.vlgmr.msrb.gmra.mxu1 %vm39_vm0, %v33_v6  ;;  %155 = vmatpush.msrb.mxu3 %v132_v18 }
  0x12   :  { %269 = vmatpush.msrb.mxu2 %v125_v13  ;;  %189 = vmatpush.msrb.mxu0 %v123_v21 }
  0x13   :  { %156 = vmatpush.msrb.mxu3 %v131_v19  ;;  %235 = vmatpush.msra.mxu1 %v216_v22 }
  0x14   :  { %270 = vmatpush.msrb.mxu2 %v124_v20 }
  0x15   :  { %236 = vmatpush.msra.mxu1 %v215_v23 }
  0x16   :  { %271 = vmatpush.msrb.mxu2 %v123_v21 }
  0x17   :  { %237 = vmatpush.msra.mxu1 %v214_v24 }
  0x19   :  { %644 = vmatmul.msk.f32.gmra.mxu1 %vm39_vm0, %v34_v7 }
  0x1a   :  { %238 = vmatpush.msra.mxu1 %v213_v25 }
  0x1c   :  { %419 = vmatpush.msrb.mxu1 %v875_v36 }
  0x1e   :  { %420 = vmatpush.msrb.mxu1 %v881_v38 }
  0x20   :  { %421 = vmatpush.msrb.mxu1 %v887_v39 }
  0x22   :  { %422 = vmatpush.msrb.mxu1 %v893_v41 }
  0x86   :  { %v63_v26 = vpop.f32.mrf.mxu0  ;;  %v66_v27 = vpop.f32.mrf.mxu1 }
  0x87   :  { %v166_v28 = vmul.f32 %v63_v26, %v63_v26  ;;  %647 = vmatmul.msk.f32.vlgmr.msrb.gmra.mxu3 %vm39_vm0, %v63_v26  ;;  %v167_v30 = vmul.f32 %v66_v27, %v66_v27 }
  0x89   :  { %649 = vmatmul.msk.f32.vlgmr.msrb.gmra.mxu0 %vm39_vm0, %v166_v28 }
  0x8e   :  { %v90_v29 = vpop.f32.mrf.mxu1 }
  0x8f   :  { %v248_v31 = vmul.f32 %v90_v29, %v90_v29  ;;  %648 = vmatmul.msk.f32.gmra.mxu3 %vm39_vm0, %v66_v27  ;;  %651 = vmatmul.msk.f32.vlgmr.msra.gmra.mxu1 %vm39_vm0, %v90_v29  ;;  %v120_v32 = vpop.f32.mrf.mxu3 }
  0x90   :  { %501 = vmatpush.msra.mxu2 %v120_v32  ;;  %565 = vmatpush.msra.mxu1 %v875_v36 }
  0x91   :  { %650 = vmatmul.msk.f32.gmra.mxu0 %vm39_vm0, %v167_v30  ;;  %653 = vmatmul.msk.f32.vlgmr.msrb.gmra.mxu2 %vm39_vm0, %v248_v31  ;;  %v117_v35 = vpop.f32.mrf.mxu2 }
  0x92   :  { %355 = vmatpush.msra.mxu3 %v117_v35  ;;  %566 = vmatpush.msra.mxu1 %v881_v38 }
  0x94   :  { %567 = vmatpush.msra.mxu1 %v887_v39 }
  0x96   :  { %v93_v33 = vpop.f32.mrf.mxu1  ;;  %568 = vmatpush.msra.mxu1 %v893_v41 }
  0x97   :  { %v249_v34 = vmul.f32 %v93_v33, %v93_v33  ;;  %652 = vmatmul.msk.f32.gmra.mxu1 %vm39_vm0, %v93_v33 }
  0x99   :  { %654 = vmatmul.msk.f32.gmra.mxu2 %vm39_vm0, %v249_v34 }
 0x106   :  { %v191_v40 = vpop.f32.mrf.mxu0 }
 0x107   :  { %v197_v43 = vmax.f32 %v191_v40, 1e-16 }
 0x109   :  { %v199_v48 = vmul.f32 -0.5, %v197_v43 }
 0x10a   :  { %v158_v52 = vpop.f32.mrf.mxu3 }
 0x10b   :  { %v201_v54 = vmul.f32 1.442695, %v199_v48  ;;  %v164_v57 = vmin.f32 %v158_v52, 50.0 }
 0x10c   :  { %v240_v37 = vpop.f32.mrf.mxu1 }
 0x10d   :  { %v246_v44 = vmin.f32 %v240_v37, 50.0  ;;  %v207_v63 = vmul.f32 1.442695, %v164_v57 }
 0x10e   :  { %v194_v55 = vpop.f32.mrf.mxu0 }
 0x10f   :  { %v289_v49 = vmul.f32 1.442695, %v246_v44  ;;  %v198_v60 = vmax.f32 %v194_v55, 1e-16 }
 0x111   :  { %v200_v2 = vmul.f32 -0.5, %v198_v60 }
 0x112   :  { %v161_v4 = vpop.f32.mrf.mxu3 }
 0x113   :  { %v203_v9 = vmul.f32 1.442695, %v200_v2  ;;  %v165_v10 = vmin.f32 %v161_v4, 50.0 }
 0x114   :  { %v273_v42 = vpop.f32.mrf.mxu2  ;;  %v243_v47 = vpop.f32.mrf.mxu1 }
 0x115   :  { %v279_v45 = vmax.f32 %v273_v42, 1e-16  ;;  %v247_v51 = vmin.f32 %v243_v47, 50.0  ;;  %v209_v17 = vmul.f32 1.442695, %v165_v10 }
 0x117   :  { %v281_v46 = vmul.f32 -0.5, %v279_v45  ;;  %v291_v58 = vmul.f32 1.442695, %v247_v51 }
 0x119   :  { %v283_v50 = vmul.f32 1.442695, %v281_v46 }
 0x11b   :  { %681 = vpow2.f32 %v283_v50 }
 0x11c   :  { %v276_v53 = vpop.f32.mrf.mxu2  ;;  %683 = vpow2.f32 %v289_v49 }
 0x11d   :  { %v280_v56 = vmax.f32 %v276_v53, 1e-16  ;;  %685 = vpow2.f32 %v201_v54 }
 0x11e   :  { %687 = vpow2.f32 %v291_v58 }
 0x11f   :  { %v282_v59 = vmul.f32 -0.5, %v280_v56 }
 0x121   :  { %v682_v61 = vpop.eup %681  ;;  %v285_v62 = vmul.f32 1.442695, %v282_v59 }
 0x122   :  { %v287_v0 = vmax.f32 %v682_v61, 1e-08  ;;  %v684_v1 = vpop.eup %683 }
 0x123   :  { %689 = vpow2.f32 %v285_v62  ;;  %v686_v6 = vpop.eup %685 }
 0x124   :  { %v293_v3 = vmul.f32 %v684_v1, %v287_v0  ;;  %691 = vpow2.f32 %v207_v63  ;;  %v688_v8 = vpop.eup %687  ;;  %v205_v14 = vmax.f32 %v686_v6, 1e-08  ;;  %v591_v0 = vld [vmem:[%s945_s4 + $0x18] sm:$0xff] }
 0x125   :  { %693 = vpow2.f32 %v203_v9 }
 0x126   :  { %295 = vxpose.xlu0.b32.start.end [1/1] (short) (narrow) %v293_v3, 32  ;;  %v396_v5 = vsel %vm39_vm0, %v293_v3, 0.0  ;;  %695 = vpow2.f32 %v209_v17 }
 0x127   :  { %v397_v7 = vrot.slane %v396_v5, 4 }
 0x129   :  { %v690_v11 = vpop.eup %689  ;;  %v398_v12 = vadd.f32 %v397_v7, %v396_v5 }
 0x12a   :  { %v288_v13 = vmax.f32 %v690_v11, 1e-08  ;;  %v692_v16 = vpop.eup %691 }
 0x12b   :  { %v399_v15 = vrot.slane %v398_v12, 2  ;;  %v211_v21 = vmul.f32 %v692_v16, %v205_v14  ;;  %v694_v26 = vpop.eup %693 }
 0x12c   :  { %v294_v18 = vmul.f32 %v688_v8, %v288_v13  ;;  %v206_v29 = vmax.f32 %v694_v26, 1e-08  ;;  %v696_v31 = vpop.eup %695 }
 0x12d   :  { %v400_v19 = vadd.f32 %v399_v15, %v398_v12 }
 0x12e   :  { %v542_v20 = vsel %vm39_vm0, %v294_v18, 0.0  ;;  %v212_v33 = vmul.f32 %v696_v31, %v206_v29 }
 0x12f   :  { %v543_v22 = vrot.slane %v542_v20, 4  ;;  %v401_v23 = vrot.slane %v400_v19, 1 }
 0x131   :  { %v544_v24 = vadd.f32 %v543_v22, %v542_v20  ;;  %v402_v25 = vadd.f32 %v401_v23, %v400_v19 }
 0x133   :  { %v545_v27 = vrot.slane %v544_v24, 2  ;;  %v403_v28 = vmul.f32 %v402_v25, %v211_v21 }
 0x135   :  { %v546_v30 = vadd.f32 %v545_v27, %v544_v24  ;;  %660 = vmatmul.msk.f32.vlgmr.msrb.gmra.mxu1 %vm39_vm0, %v403_v28 }
 0x137   :  { %v547_v32 = vrot.slane %v546_v30, 1 }
 0x139   :  { %v548_v34 = vadd.f32 %v547_v32, %v546_v30 }
 0x13b   :  { %v549_v35 = vmul.f32 %v548_v34, %v212_v33 }
 0x13d   :  { %666 = vmatmul.msk.f32.vlgmr.msra.gmra.mxu1 %vm39_vm0, %v549_v35 }
 0x146   :  { %442 = vxpose.xlu0.b32.start.end [1/1] (short) (narrow) %v294_v18, 32 }
 0x1ca   :  { %v311_v37 = vpop.trf.xlu0 }
 0x1cb   :  { %655 = vmatmul.msk.f32.vlgmr.msra.gmra.mxu3 %vm327_vm1, %v311_v37 }
 0x1d2   :  { %v312_v40 = vpop.trf.xlu0 }
 0x1d3   :  { %656 = vmatmul.msk.f32.gmra.mxu3 %vm327_vm1, %v312_v40 }
 0x1da   :  { %v313_v42 = vpop.trf.xlu0 }
 0x1db   :  { %657 = vmatmul.msk.f32.gmra.mxu3 %vm327_vm1, %v313_v42 }
 0x1e2   :  { %v314_v43 = vpop.trf.xlu0 }
 0x1e3   :  { %658 = vmatmul.msk.f32.gmra.mxu3 %vm327_vm1, %v314_v43 }
 0x1ea   :  { %v458_v44 = vpop.trf.xlu0 }
 0x1eb   :  { %661 = vmatmul.msk.f32.vlgmr.msra.gmra.mxu2 %vm327_vm1, %v458_v44 }
 0x1f2   :  { %v459_v45 = vpop.trf.xlu0 }
 0x1f3   :  { %662 = vmatmul.msk.f32.gmra.mxu2 %vm327_vm1, %v459_v45 }
 0x1fa   :  { %v460_v46 = vpop.trf.xlu0 }
 0x1fb   :  { %663 = vmatmul.msk.f32.gmra.mxu2 %vm327_vm1, %v460_v46 }
 0x202   :  { %v461_v47 = vpop.trf.xlu0 }
 0x203   :  { %664 = vmatmul.msk.f32.gmra.mxu2 %vm327_vm1, %v461_v47 }
 0x24e   :  { %v357_v48 = vpop.f32.mrf.mxu3 }
 0x24f   :  { %v369_v55 = vmul.f32 %v357_v48, %v893_v41 }
 0x256   :  { %v360_v49 = vpop.f32.mrf.mxu3 }
 0x257   :  { %v370_v54 = vmul.f32 %v360_v49, %v887_v39 }
 0x25e   :  { %v363_v50 = vpop.f32.mrf.mxu3 }
 0x25f   :  { %v371_v53 = vmul.f32 %v363_v50, %v881_v38 }
 0x266   :  { %v366_v51 = vpop.f32.mrf.mxu3 }
 0x267   :  { %v372_v52 = vmul.f32 %v366_v51, %v875_v36 }
 0x269   :  { %388 = vmatpush.msra.mxu0 %v372_v52 }
 0x26b   :  { %389 = vmatpush.msra.mxu0 %v371_v53 }
 0x26d   :  { %390 = vmatpush.msra.mxu0 %v370_v54 }
 0x26e   :  { %v503_v56 = vpop.f32.mrf.mxu2 }
 0x26f   :  { %391 = vmatpush.msra.mxu0 %v369_v55  ;;  %v515_v63 = vmul.f32 %v503_v56, %v893_v41  ;;  %v588_v41 = vld [vmem:[%s945_s4] sm:$0xff] }
 0x270   :  { %659 = vmatmul.msk.f32.vlgmr.msra.gmra.mxu0 %vm39_vm0, %v211_v21 }
 0x276   :  { %v506_v57 = vpop.f32.mrf.mxu2 }
 0x277   :  { %v516_v62 = vmul.f32 %v506_v57, %v887_v39  ;;  %v424_v39 = vpop.f32.mrf.mxu1 }
 0x278   :  { %697 = vrcp.f32 %v424_v39  ;;  %v438_v6 = vand.u32 2147483648, %v424_v39  ;;  %vm432_vm3 = vweird.f32 %v424_v39  ;;  %v436_v7 = vand.u32 2147483647, %v424_v39 }
 0x27a   :  { %v439_v9 = vor.u32 1.1754944e-38, %v438_v6  ;;  %vm437_vm5 = vcmp.eq.f32.partialorder %v436_v7, 8.507059e+37 }
 0x27e   :  { %v509_v58 = vpop.f32.mrf.mxu2  ;;  %v698_v1 = vpop.eup %697 }
 0x27f   :  { %v517_v61 = vmul.f32 %v509_v58, %v881_v38  ;;  %v589_v38 = vld [vmem:[%s945_s4 + $0x8] sm:$0xff]  ;;  %v428_v2 = vmul.f32 %v698_v1, %v424_v39  ;;  %vm433_vm2 = vweird.f32 %v698_v1  ;;  %v570_v12 = vpop.f32.mrf.mxu1 }
 0x280   :  { %vm434_vm4 = vmor %vm432_vm3, %vm433_vm2  ;;  %699 = vrcp.f32 %v570_v12  ;;  %v584_v19 = vand.u32 2147483648, %v570_v12  ;;  %vm578_vm7 = vweird.f32 %v570_v12  ;;  %v582_v20 = vand.u32 2147483647, %v570_v12 }
 0x281   :  { %v429_v3 = vsub.f32 1.0, %v428_v2 }
 0x282   :  { %v585_v22 = vor.u32 1.1754944e-38, %v584_v19  ;;  %vm583_vm9 = vcmp.eq.f32.partialorder %v582_v20, 8.507059e+37 }
 0x283   :  { %v430_v4 = vmul.f32 %v698_v1, %v429_v3 }
 0x285   :  { %v431_v5 = vadd.f32 %v698_v1, %v430_v4 }
 0x286   :  { %v512_v59 = vpop.f32.mrf.mxu2  ;;  %v700_v14 = vpop.eup %699 }
 0x287   :  { %v518_v60 = vmul.f32 %v512_v59, %v875_v36  ;;  %v590_v36 = vld [vmem:[%s945_s4 + $0x10] sm:$0xff]  ;;  %v435_v8 = vsel %vm434_vm4, %v698_v1, %v431_v5  ;;  %v574_v15 = vmul.f32 %v700_v14, %v570_v12  ;;  %vm579_vm6 = vweird.f32 %v700_v14  ;;  %s727_s4 = smov [#allocation2]  }
 0x288   :  { %v440_v11 = vsel %vm437_vm5, %v439_v9, %v435_v8  ;;  %vm580_vm8 = vmor %vm578_vm7, %vm579_vm6  ;;  %s627_s23 = sshll.u32 %s727_s4, 4  ;;  %s628_s23 = int_to_ptr.vmem [resolvable:$true] %s627_s23 }
 0x289   :  { %534 = vmatpush.msrb.mxu0 %v518_v60  ;;  %v575_v16 = vsub.f32 1.0, %v574_v15 }
 0x28b   :  { %535 = vmatpush.msrb.mxu0 %v517_v61  ;;  %v576_v17 = vmul.f32 %v700_v14, %v575_v16 }
 0x28d   :  { %536 = vmatpush.msrb.mxu0 %v516_v62  ;;  %v577_v18 = vadd.f32 %v700_v14, %v576_v17 }
 0x28f   :  { %537 = vmatpush.msrb.mxu0 %v515_v63  ;;  %v581_v21 = vsel %vm580_vm8, %v700_v14, %v577_v18 }
 0x290   :  { %665 = vmatmul.msk.f32.vlgmr.msrb.gmra.mxu0 %vm39_vm0, %v212_v33  ;;  %v586_v24 = vsel %vm583_vm9, %v585_v22, %v581_v21 }
 0x291   :  { %610 = vmatpush.msra.mxu0 %v591_v0 }
 0x293   :  { %611 = vmatpush.msra.mxu0 %v590_v36 }
 0x295   :  { %612 = vmatpush.msra.mxu0 %v589_v38 }
 0x297   :  { %613 = vmatpush.msra.mxu0 %v588_v41 }
 0x2ed   :  { %v393_v10 = vpop.f32.mrf.mxu0 }
 0x2ee   :  { %v441_v13 = vmul.f32 %v440_v11, %v393_v10 }
 0x2f0   :  { %667 = vmatmul.msk.f32.vlgmr.msra.gmra.mxu0 %vm39_vm0, %v441_v13 }
 0x30d   :  { %v539_v23 = vpop.f32.mrf.mxu0 }
 0x30e   :  { %v587_v25 = vmul.f32 %v586_v24, %v539_v23 }
 0x310   :  { %668 = vmatmul.msk.f32.gmra.mxu0 %vm39_vm0, %v587_v25 }
 0x36d   :  { %v615_v26 = vpop.f32.mrf.mxu0 }
 0x36e   :  { %621 = vst.msk [vmem:[#allocation2] sm:$0xff] %vm39_vm0, %v615_v26 }
 0x38d   :  { %v618_v27 = vpop.f32.mrf.mxu0 }
 0x38e   :  { %622 = vst.msk [vmem:[#allocation2 + $0x8] sm:$0xff] %vm39_vm0, %v618_v27 }
 0x38f   :  { %635 = dma.vmem_to_hbm [thread:$0]  %s628_s23, 256, %s630_s26, [#allocation3], %s728_s27, %s728_s27, %s729_s1  }
 0x390   :  { %725 = dma.done.wait [#allocation3], 256  }
 0x391   :  { %726 = vsyncadd [#allocation3], 4294967040 }
 0x392   :  { %640 = vsyncpa [#allocation3], 1 }

</bundles_post_ra>
